<compile_context>
chip_gen: v7x
topology: tpu7x:2x2x1
jax: 0.10.0
libtpu: 0.0.40
codegen_flags: <defaults>
</compile_context>

<pallas_src>
import numpy as np
import jax
import jax.numpy as jnp
from jax.experimental import pallas as pl
from jax.experimental.pallas import tpu as pltpu


def _round_up(a, m):
    return (a + m - 1) // m * m


def _pad2d(a, rows, cols):
    """Zero-pad a 2-D array up to (rows, cols)."""
    return jnp.pad(a, ((0, rows - a.shape[0]), (0, cols - a.shape[1])))


def _pick_batch_tile(B, max_rows=512):
    """Pick a batch tile (multiple of 8) that minimizes padding waste."""
    Br = _round_up(B, 8)
    if Br <= max_rows:
        return Br
    n_tiles = pl.cdiv(Br, max_rows)
    return _round_up(pl.cdiv(Br, n_tiles), 8)


# -----------------------------------------------------------------------------
# Kernel: per batch tile -> 3 MXU matmuls, cos on the EUP, relu on the VPU.
# -----------------------------------------------------------------------------
def magic_activate2_kernel(x_ref, omega_ref, pbias_ref, wcr_ref, wrelu_ref,
                           obias_ref, o_ref):
    x = x_ref[...]                                                # (TM, Np) f32

    # Fused projection [x@omega | x@rand_omega] + [b | rb]; kept f32 so the
    # cos() phase stays accurate (phase magnitude ~ O(rng*sqrt(N))).
    phase = jnp.dot(x, omega_ref[...],
                    preferred_element_type=jnp.float32) + pbias_ref[...]
    proj = jnp.cos(phase)                                         # (TM, 2Np) f32

    relu_x = jnp.maximum(x, 0.0)                                  # f32

    # Two bf16-operand MXU matmuls with f32 accumulation + folded bias.
    out = (jnp.dot(proj.astype(jnp.bfloat16), wcr_ref[...],
                   preferred_element_type=jnp.float32)
           + jnp.dot(relu_x.astype(jnp.bfloat16), wrelu_ref[...],
                     preferred_element_type=jnp.float32)
           + obias_ref[...])

    o_ref[...] = out.astype(o_ref.dtype)


# -----------------------------------------------------------------------------
# Parameter construction (mirrors the PyTorch module's shapes / init style).
# -----------------------------------------------------------------------------
def init_params(key, n_in, rng=10.0):
    n_out = n_in
    ks = jax.random.split(key, 7)
    omega = jnp.linspace(-rng, rng, n_in * n_out).reshape(n_out, n_in).T  # (n_in, n_out)
    rand_omega = jax.random.normal(ks[0], (n_in, n_out), jnp.float32) * rng
    bias = jax.random.uniform(ks[1], (n_out,), jnp.float32) * jnp.pi
    rand_bias = jax.random.uniform(ks[2], (n_out,), jnp.float32) * jnp.pi
    lim_rff = 1.0 / np.sqrt(2 * n_out)
    rff_fc_w = jax.random.uniform(ks[3], (n_out, 2 * n_out), jnp.float32,
                                  minval=-lim_rff, maxval=lim_rff)
    rff_fc_b = jax.random.uniform(ks[4], (n_out,), jnp.float32,
                                  minval=-lim_rff, maxval=lim_rff)
    lim_main = 1.0 / np.sqrt(7 * n_in)
    main_fc_w = jax.random.uniform(ks[5], (n_in, 7 * n_in), jnp.float32,
                                   minval=-lim_main, maxval=lim_main)
    main_fc_b = jax.random.uniform(ks[6], (n_in,), jnp.float32,
                                   minval=-lim_main, maxval=lim_main)
    return dict(omega=omega, rand_omega=rand_omega, bias=bias,
                rand_bias=rand_bias, rff_fc_w=rff_fc_w, rff_fc_b=rff_fc_b,
                main_fc_w=main_fc_w, main_fc_b=main_fc_b)


def fuse_params(params):
    """Exact folding + 128-padding. Call once and reuse across forwards."""
    N = params["omega"].shape[0]
    Np = _round_up(max(N, 128), 128)

    rff_w_t = params["rff_fc_w"].T                                  # (2N, N)
    main_w_t = params["main_fc_w"].T                                # (7N, N)
    main_w_rff = main_w_t[6 * N:]                                   # (N, N)
    w_relu = main_w_t[:6 * N].reshape(6, N, N).sum(axis=0)          # (N, N)
    w_cos = rff_w_t[:N] @ main_w_rff                                # (N, N)
    w_rand = rff_w_t[N:] @ main_w_rff                               # (N, N)
    out_bias = params["rff_fc_b"] @ main_w_rff + params["main_fc_b"]  # (N,)

    omega_cat = jnp.concatenate(
        [_pad2d(params["omega"], Np, Np),
         _pad2d(params["rand_omega"], Np, Np)], axis=1).astype(jnp.float32)   # (Np, 2Np)
    proj_bias = jnp.concatenate(
        [_pad2d(params["bias"][None, :], 1, Np),
         _pad2d(params["rand_bias"][None, :], 1, Np)],
        axis=1).astype(jnp.float32)                                           # (1, 2Np)
    w_cr = jnp.concatenate(
        [_pad2d(w_cos, Np, Np), _pad2d(w_rand, Np, Np)],
        axis=0).astype(jnp.bfloat16)                                          # (2Np, Np)
    w_relu_p = _pad2d(w_relu, Np, Np).astype(jnp.bfloat16)                    # (Np, Np)
    out_bias_p = _pad2d(out_bias[None, :], 1, Np).astype(jnp.float32)         # (1, Np)

    return dict(N=N, Np=Np, omega_cat=omega_cat, proj_bias=proj_bias,
                w_cr=w_cr, w_relu=w_relu_p, out_bias=out_bias_p)


# -----------------------------------------------------------------------------
# Forward passes.
# -----------------------------------------------------------------------------
def magic_activate2_fused(x, fused, *, block_rows=512):
    B, n_in = x.shape
    N, Np = fused["N"], fused["Np"]
    assert n_in == N, "feature size mismatch with fused params"

    TM = _pick_batch_tile(B, block_rows)
    Bp = _round_up(B, TM)
    x_p = _pad2d(x.astype(jnp.float32), Bp, Np)                               # (Bp, Np)

    # ---- VMEM budget: resident weights (x2 buffers) + pipelined x/out tiles ----
    # TODO(synk): for very large N (resident weights > ~48 MiB on v7x) add a
    # K-tiling grid axis over the weight matrices instead of keeping them resident.
    f32, bf16 = 4, 2
    weight_bytes = (fused["omega_cat"].size * f32 + fused["proj_bias"].size * f32
                    + fused["w_cr"].size * bf16 + fused["w_relu"].size * bf16
                    + fused["out_bias"].size * f32)
    io_bytes = 2 * 2 * TM * Np * f32                         # x/out double-buffered
    interm_bytes = TM * 2 * Np * (2 * f32 + bf16) + TM * Np * (2 * f32 + bf16)
    vmem_limit = int(min(48 << 20,
                         max(16 << 20,
                             2 * weight_bytes + io_bytes + 2 * interm_bytes)))

    cost = pl.CostEstimate(
        flops=int(10 * Bp * Np * Np),            # (Np,2Np) + (2Np,Np) + (Np,Np)
        transcendentals=int(Bp * 2 * Np),
        bytes_accessed=int(2 * Bp * Np * f32 + weight_bytes),
    )

    out_p = pl.pallas_call(
        magic_activate2_kernel,
        out_shape=jax.ShapeDtypeStruct((Bp, Np), jnp.float32),
        grid=(Bp // TM,),
        in_specs=[
            pl.BlockSpec((TM, Np), lambda i: (i, 0)),        # x tile (pipelined)
            pl.BlockSpec((Np, 2 * Np), lambda i: (0, 0)),    # fused projection weight
            pl.BlockSpec((1, 2 * Np), lambda i: (0, 0)),     # fused projection bias
            pl.BlockSpec((2 * Np, Np), lambda i: (0, 0)),    # folded RFF->out weight
            pl.BlockSpec((Np, Np), lambda i: (0, 0)),        # summed relu weight
            pl.BlockSpec((1, Np), lambda i: (0, 0)),         # folded output bias
        ],
        out_specs=pl.BlockSpec((TM, Np), lambda i: (i, 0)),
        compiler_params=pltpu.CompilerParams(
            dimension_semantics=("parallel",),
            vmem_limit_bytes=vmem_limit),
        cost_estimate=cost,
    )(x_p, fused["omega_cat"], fused["proj_bias"], fused["w_cr"],
      fused["w_relu"], fused["out_bias"])

    return out_p[:B, :N].astype(x.dtype)


def magic_activate2(x, params, *, block_rows=512):
    """Convenience one-shot API (re-folds params; fold once for repeated use)."""
    return magic_activate2_fused(x, fuse_params(params), block_rows=block_rows)


def magic_activate2_ref(x, params):
    """Pure-JAX f32 reference mirroring the PyTorch forward exactly."""
    x_rp = jnp.cos(x @ params["rand_omega"] + params["rand_bias"])
    x_c = jnp.cos(x @ params["omega"] + params["bias"])
    rff_out = jnp.concatenate([x_c, x_rp], axis=-1) @ params["rff_fc_w"].T \
        + params["rff_fc_b"]
    r = jax.nn.relu(x)
    big = jnp.concatenate([r, r, r, r, r, r, rff_out], axis=-1)
    return big @ params["main_fc_w"].T + params["main_fc_b"]


if __name__ == "__main__":
    B, n_in = 16, 32
    key = jax.random.PRNGKey(0)
    k_x, k_p = jax.random.split(key)
    x = jax.random.normal(k_x, (B, n_in), jnp.float32)
    params = init_params(k_p, n_in)

    fused = fuse_params(params)
    # block_rows=8 forces a multi-step grid so the pipelined path is exercised.
    out = magic_activate2_fused(x, fused, block_rows=8)
    jax.block_until_ready(out)

    ref = magic_activate2_ref(x, params)
    # bf16 operands on the two downstream matmuls (f32 accumulation) -> relaxed tol.
    np.testing.assert_allclose(np.asarray(out), np.asarray(ref),
                               rtol=2e-2, atol=2e-2)
    print("KERNEL_OK")
</pallas_src>

<mosaic_0001>
module attributes {stable_mosaic.version = 11 : i64} {
  func.func @magic_activate2_kernel(%arg0: i32, %arg1: memref<8x128xf32, #tpu.memory_space<vmem>>, %arg2: memref<128x256xf32, #tpu.memory_space<vmem>>, %arg3: memref<1x256xf32, #tpu.memory_space<vmem>>, %arg4: memref<256x128xbf16, #tpu.memory_space<vmem>>, %arg5: memref<128x128xbf16, #tpu.memory_space<vmem>>, %arg6: memref<1x128xf32, #tpu.memory_space<vmem>>, %arg7: memref<8x128xf32, #tpu.memory_space<vmem>>) attributes {dimension_semantics = [#tpu.dimension_semantics<parallel>], iteration_bounds = array<i64: 2>, scalar_prefetch = 0 : i64, scratch_operands = 0 : i64, tpu.core_type = #tpu.core_type<tc>, window_params = [{transform_indices = @transform_0, window_bounds = array<i64: 8, 128>}, {pipeline_mode = #tpu.pipeline_mode<synchronous>, transform_indices = @transform_1, window_bounds = array<i64: 128, 256>}, {pipeline_mode = #tpu.pipeline_mode<synchronous>, transform_indices = @transform_2, window_bounds = array<i64: 1, 256>}, {pipeline_mode = #tpu.pipeline_mode<synchronous>, transform_indices = @transform_3, window_bounds = array<i64: 256, 128>}, {pipeline_mode = #tpu.pipeline_mode<synchronous>, transform_indices = @transform_4, window_bounds = array<i64: 128, 128>}, {pipeline_mode = #tpu.pipeline_mode<synchronous>, transform_indices = @transform_5, window_bounds = array<i64: 1, 128>}, {transform_indices = @transform_6, window_bounds = array<i64: 8, 128>}]} {
    %c0 = arith.constant 0 : index
    %c0_0 = arith.constant 0 : index
    %0 = vector.load %arg1[%c0, %c0_0] : memref<8x128xf32, #tpu.memory_space<vmem>>, vector<8x128xf32>
    %c0_1 = arith.constant 0 : index
    %c0_2 = arith.constant 0 : index
    %1 = vector.load %arg2[%c0_1, %c0_2] : memref<128x256xf32, #tpu.memory_space<vmem>>, vector<128x256xf32>
    %cst = arith.constant dense<0.000000e+00> : vector<8x256xf32>
    %2 = tpu.matmul %0, %1, %cst {dimension_numbers = #tpu.dot_dimension_numbers<[1], [0], [0], [1], [0, 0, 1, 1], [], []>} : vector<8x128xf32>, vector<128x256xf32>, vector<8x256xf32> -> vector<8x256xf32>
    %c0_3 = arith.constant 0 : index
    %c0_4 = arith.constant 0 : index
    %3 = vector.load %arg3[%c0_3, %c0_4] : memref<1x256xf32, #tpu.memory_space<vmem>>, vector<1x256xf32>
    %4 = vector.broadcast %3 : vector<1x256xf32> to vector<8x256xf32>
    %5 = arith.addf %2, %4 : vector<8x256xf32>
    %6 = math.cos %5 : vector<8x256xf32>
    %cst_5 = arith.constant 0.000000e+00 : f32
    %7 = vector.broadcast %cst_5 : f32 to vector<8x128xf32>
    %8 = arith.maximumf %0, %7 : vector<8x128xf32>
    %9 = arith.truncf %6 : vector<8x256xf32> to vector<8x256xbf16>
    %c0_6 = arith.constant 0 : index
    %c0_7 = arith.constant 0 : index
    %10 = vector.load %arg4[%c0_6, %c0_7] : memref<256x128xbf16, #tpu.memory_space<vmem>>, vector<256x128xbf16>
    %cst_8 = arith.constant dense<0.000000e+00> : vector<8x128xf32>
    %11 = tpu.matmul %9, %10, %cst_8 {dimension_numbers = #tpu.dot_dimension_numbers<[1], [0], [0], [1], [0, 0, 1, 1], [], []>} : vector<8x256xbf16>, vector<256x128xbf16>, vector<8x128xf32> -> vector<8x128xf32>
    %12 = arith.truncf %8 : vector<8x128xf32> to vector<8x128xbf16>
    %c0_9 = arith.constant 0 : index
    %c0_10 = arith.constant 0 : index
    %13 = vector.load %arg5[%c0_9, %c0_10] : memref<128x128xbf16, #tpu.memory_space<vmem>>, vector<128x128xbf16>
    %cst_11 = arith.constant dense<0.000000e+00> : vector<8x128xf32>
    %14 = tpu.matmul %12, %13, %cst_11 {dimension_numbers = #tpu.dot_dimension_numbers<[1], [0], [0], [1], [0, 0, 1, 1], [], []>} : vector<8x128xbf16>, vector<128x128xbf16>, vector<8x128xf32> -> vector<8x128xf32>
    %15 = arith.addf %11, %14 : vector<8x128xf32>
    %c0_12 = arith.constant 0 : index
    %c0_13 = arith.constant 0 : index
    %16 = vector.load %arg6[%c0_12, %c0_13] : memref<1x128xf32, #tpu.memory_space<vmem>>, vector<1x128xf32>
    %17 = vector.broadcast %16 : vector<1x128xf32> to vector<8x128xf32>
    %18 = arith.addf %15, %17 : vector<8x128xf32>
    %c0_14 = arith.constant 0 : index
    %c0_15 = arith.constant 0 : index
    %19 = vector.load %arg7[%c0_14, %c0_15] : memref<8x128xf32, #tpu.memory_space<vmem>>, vector<8x128xf32>
    tpu.vector_store %arg7[%c0_14, %c0_15], %18 {strides = array<i32>} : memref<8x128xf32, #tpu.memory_space<vmem>>, vector<8x128xf32>,
    return
  }
  func.func @transform_0(%arg0: i32) -> (i32, i32) {
    %c0_i32 = arith.constant 0 : i32
    %c0_i32_0 = arith.constant 0 : i32
    return %arg0, %c0_i32 : i32, i32
  }
  func.func @transform_1(%arg0: i32) -> (i32, i32) {
    %c0_i32 = arith.constant 0 : i32
    %c0_i32_0 = arith.constant 0 : i32
    %c0_i32_1 = arith.constant 0 : i32
    return %c0_i32, %c0_i32_0 : i32, i32
  }
  func.func @transform_2(%arg0: i32) -> (i32, i32) {
    %c0_i32 = arith.constant 0 : i32
    %c0_i32_0 = arith.constant 0 : i32
    %c0_i32_1 = arith.constant 0 : i32
    return %c0_i32, %c0_i32_0 : i32, i32
  }
  func.func @transform_3(%arg0: i32) -> (i32, i32) {
    %c0_i32 = arith.constant 0 : i32
    %c0_i32_0 = arith.constant 0 : i32
    %c0_i32_1 = arith.constant 0 : i32
    return %c0_i32, %c0_i32_0 : i32, i32
  }
  func.func @transform_4(%arg0: i32) -> (i32, i32) {
    %c0_i32 = arith.constant 0 : i32
    %c0_i32_0 = arith.constant 0 : i32
    %c0_i32_1 = arith.constant 0 : i32
    return %c0_i32, %c0_i32_0 : i32, i32
  }
  func.func @transform_5(%arg0: i32) -> (i32, i32) {
    %c0_i32 = arith.constant 0 : i32
    %c0_i32_0 = arith.constant 0 : i32
    %c0_i32_1 = arith.constant 0 : i32
    return %c0_i32, %c0_i32_0 : i32, i32
  }
  func.func @transform_6(%arg0: i32) -> (i32, i32) {
    %c0_i32 = arith.constant 0 : i32
    %c0_i32_0 = arith.constant 0 : i32
    return %arg0, %c0_i32 : i32, i32
  }
}

</mosaic_0001>

<bundles_post_ra>
// kernel: tpu_custom_call.1
= control target key start
LH: loop header
LB: loop body
LE: loop exit
PB: predicated region body
PF: predicated region fallthrough
CT: control target
= control target key end

     0   :  { %s1889_s0 = inlined_call_operand.hbm [shape: f32[16,128], index: 0, kind: input, shape index: {}]   ;;  %s1890_s1 = inlined_call_operand.hbm [shape: f32[128,256], index: 1, kind: input, shape index: {}]   ;;  %s1891_s2 = inlined_call_operand.vmem [shape: f32[1,256], index: 2, kind: input, shape index: {}]   ;;  %s1892_s3 = inlined_call_operand.hbm [shape: bf16[256,128], index: 3, kind: input, shape index: {}]   ;;  %s1893_s4 = inlined_call_operand.hbm [shape: bf16[128,128], index: 4, kind: input, shape index: {}]   ;;  %s1894_s5 = inlined_call_operand.vmem [shape: f32[1,128], index: 5, kind: input, shape index: {}]   ;;  %s1895_s6 = inlined_call_operand.hbm [shape: f32[16,128], index: 6, kind: output, shape index: {}]  }
   0x1   :  { %1899 = sst [smem:[#allocation15_spill]] %s1890_s1 }
   0x2   :  { %11 = vsyncpa [#allocation3], 0 }
   0x3   :  { %13 = vsyncpa [#allocation3 + $0x1], 0 }
   0x4   :  { %14 = vsyncpa [#allocation6], 0 }
   0x5   :  { %15 = vsyncpa [#allocation9], 0 }
   0x6   :  { %16 = vsyncpa [#allocation4], 0 }
   0x7   :  { %18 = vsyncpa [#allocation4 + $0x1], 0  ;;  %s1537_s21 = smov 0   ;;  %s1539_s22 = smov 0  }
   0x8   :  { %s1541_s23 = smov 0   ;;  %s1543_s24 = smov 0  }
   0x9 LB: > { %s1558_s25 = sadd.s32 4294967295, %s1483_s24   ;;  %s1032_s26 = sadd.s32 4294967294, %s1483_s24   ;;  %s1483_s24 = sphi %s1543_s24, %s1924_s24   ;;  %s1479_s23 = sphi %s1541_s23, %s1923_s23   ;;  %s1475_s22 = sphi %s1539_s22, %s1922_s22   ;;  %s1471_s21 = sphi %s1537_s21, %s1921_s21  }
   0xa   : > { %p44_p0 = scmp.ne.s32.totalorder %s1475_s22, %s1471_s21  ;;  %p1896_p1 = scmp.eq.s32.totalorder %s1558_s25, 0 }
   0xb   : > { %p179_p3 = scmp.eq.s32.totalorder %s1032_s26, 1  ;;  %p1033_p5 = scmp.ge.s32.totalorder %s1483_s24, 1 }
   0xc   : > { %p1567_p4 = por %p1896_p1, %p44_p0  ;;  %p186_p7 = scmp.lt.s32.totalorder %s1483_s24, 3 }
   0xd   : > { %p1572_p6 = por %p179_p3, %p44_p0  ;;  %s1485_s30 = smov [#allocation5]  }
   0xe   : > { %s1900_s27 = scalar_select %p1567_p4, 1, 0 }
   0xf   : > { %s1901_s28 = scalar_select %p1572_p6, 1, 0 }
  0x10   : > { %p1577_p8 = pnand %p1033_p5, %p186_p7  ;;  %s198_s7 = sshll.u32 %s1485_s30, 4  ;;  %s1581_s7 = int_to_ptr.vmem [resolvable:$true] %s198_s7 }
  0x11   : > { %s1486_s9 = smov [#allocation7]   ;;  %s1904_s1 = sld [smem:[#allocation15_spill]] }
  0x12   : > { %s1902_s29 = scalar_select %p1577_p8, 1, 0 }
  0x13   : > { %p1190_p9 = pneg %p1577_p8  ;;  %s214_s10 = sshll.u32 %s1486_s9, 4  ;;  %s1592_s10 = int_to_ptr.vmem [resolvable:$true] %s214_s10 }
  0x15   : > { %p1588_p11 = pnand %p1190_p9, %p1896_p1 }
  0x17   : > { %s1295_s13 = scalar_lea.hbm %s1904_s1, 4096  ;;  %p1602_p13 = pneg %p1588_p11 }
  0x18   : > { %p1296_p12 = scmp.ne.s32.totalorder %s1904_s1, %s1295_s13  ;;  %p1302_p5 = scmp.lt.u32.totalorder %s1295_s13, %s1904_s1 }
  0x1a   : > { %p1298_p0 = pnand %p1602_p13, %p1296_p12 }
  0x1c   : > { %p1299_p3 = pneg %p1298_p0 }
  0x1e   : > { %p1304_p7 = pnand %p1302_p5, %p1299_p3 }
  0x20   : > { %1307 = shalt.err (!%p1304_p7)
}
  0x21   : > { %s1308_s19 = scalar_lea.vmem %s1581_s7, 4096  ;;  %p1316_p2 = scmp.lt.s32.totalorder %s1581_s7, %s1581_s7 }
  0x22   : > { %p1309_p9 = scmp.ne.s32.totalorder %s1581_s7, %s1308_s19  ;;  %p1317_p6 = scmp.lt.s32.totalorder %s1308_s19, %s1308_s19 }
  0x24   : > { %p1311_p10 = pnand %p1309_p9, %p1602_p13  ;;  %p1318_p12 = por %p1317_p6, %p1316_p2 }
  0x26   : > { %p1312_p1 = pneg %p1311_p10 }
  0x28   : > { %p1319_p0 = pnand %p1318_p12, %p1312_p1 }
  0x2a   : > { %1322 = shalt.err (!%p1319_p0)
}
  0x2b   : > { %s1487_s20 = smov 256   ;;  %s1488_s26 = smov 16  }
  0x2c   : > { %1193 = dma.hbm_to_vmem [thread:$0]  (!%p1588_p11), %s1904_s1, 4096, %s1581_s7, [#allocation6], %s1487_s20, %s1487_s20, %s1488_s26  }
  0x2d   : > { %s1323_s13 = scalar_lea.hbm %s1892_s3, 2048 }
  0x2e   : > { %p1324_p2 = scmp.ne.s32.totalorder %s1892_s3, %s1323_s13  ;;  %p1330_p10 = scmp.lt.u32.totalorder %s1323_s13, %s1892_s3 }
  0x30   : > { %p1326_p1 = pnand %p1324_p2, %p1602_p13 }
  0x32   : > { %p1327_p6 = pneg %p1326_p1 }
  0x34   : > { %p1332_p3 = pnand %p1330_p10, %p1327_p6 }
  0x36   : > { %1335 = shalt.err (!%p1332_p3)
}
  0x37   : > { %s1336_s7 = scalar_lea.vmem %s1592_s10, 2048  ;;  %p1344_p12 = scmp.lt.s32.totalorder %s1592_s10, %s1592_s10 }
  0x38   : > { %p1337_p5 = scmp.ne.s32.totalorder %s1592_s10, %s1336_s7  ;;  %p1345_p0 = scmp.lt.s32.totalorder %s1336_s7, %s1336_s7 }
  0x3a   : > { %p1339_p7 = pnand %p1337_p5, %p1602_p13  ;;  %p1346_p2 = por %p1345_p0, %p1344_p12 }
  0x3c   : > { %p1340_p9 = pneg %p1339_p7 }
  0x3e   : > { %p1347_p1 = pnand %p1346_p2, %p1340_p9 }
  0x40   : > { %1350 = shalt.err (!%p1347_p1)
}
  0x41   : > { %s1489_s19 = smov 64   ;;  %s1490_s20 = smov 4  }
  0x42   : > { %1196 = dma.hbm_to_vmem [thread:$0]  (!%p1588_p11), %s1892_s3, 2048, %s1592_s10, [#allocation6], %s1489_s19, %s1489_s19, %s1490_s20  }
  0x43   : > { %s1491_s9 = smov [#allocation8]   ;;  %s1647_s12 = sadd.s32 1, %s1483_s24  }
  0x44   : > { %s227_s11 = sshll.u32 %s1491_s9, 4  ;;  %s1351_s15 = scalar_lea.hbm %s1893_s4, 1024  ;;  %s228_s11 = int_to_ptr.vmem [resolvable:$true] %s227_s11 }
  0x45   : > { %p1352_p6 = scmp.ne.s32.totalorder %s1893_s4, %s1351_s15  ;;  %p1358_p5 = scmp.lt.u32.totalorder %s1351_s15, %s1893_s4 }
  0x47   : > { %p1354_p10 = pnand %p1352_p6, %p1602_p13 }
  0x49   : > { %p1355_p3 = pneg %p1354_p10 }
  0x4b   : > { %p1360_p7 = pnand %p1358_p5, %p1355_p3 }
  0x4d   : > { %1363 = shalt.err (!%p1360_p7)
}
  0x4e   : > { %s1364_s10 = scalar_lea.vmem %s228_s11, 1024  ;;  %p1372_p2 = scmp.lt.s32.totalorder %s228_s11, %s228_s11 }
  0x4f   : > { %p1365_p9 = scmp.ne.s32.totalorder %s228_s11, %s1364_s10  ;;  %p1373_p1 = scmp.lt.s32.totalorder %s1364_s10, %s1364_s10 }
  0x51   : > { %p1367_p12 = pnand %p1365_p9, %p1602_p13  ;;  %p1374_p4 = por %p1373_p1, %p1372_p2 }
  0x53   : > { %p1368_p0 = pneg %p1367_p12 }
  0x55   : > { %p1375_p8 = pnand %p1374_p4, %p1368_p0 }
  0x57   : > { %1378 = shalt.err (!%p1375_p8)
}
  0x58   : > { %1199 = dma.hbm_to_vmem [thread:$0]  (!%p1588_p11), %s1893_s4, 1024, %s228_s11, [#allocation9], %s1489_s19, %s1489_s19, %s1490_s20  }
  0x59   : > { %s28_s1 = ssub.s32 %s1483_s24, %s1647_s12  ;;  %s31_s16 = sadd.s32 1, %s1479_s23 }
  0x5a   : > { %p29_p4 = scmp.eq.s32.totalorder %s28_s1, 0  ;;  %p38_p8 = scmp.ne.s32.totalorder %s1479_s23, %s1475_s22 }
  0x5b   : > { %p39_p13 = scmp.eq.s32.totalorder %s1483_s24, 0  ;;  %p1211_p6 = scmp.lt.s32.totalorder %s1483_s24, 2 }
  0x5c   : > { %s1675_s8 = scalar_select %p29_p4, %s1479_s23, %s31_s16  }
  0x5d   : > { %p40_p10 = por %p39_p13, %p38_p8  ;;  %p1906_p3 = scmp.eq.s32.totalorder %s1558_s25, 1 }
  0x5e   : > { %s244_s13 = sand.u32 1, %s1479_s23   ;;  %s1039_s14 = sshll.u32 %s1483_s24, 7 }
  0x5f   : > { %p1679_p5 = por %p1906_p3, %p38_p8  ;;  %s1038_s15 = sshll.u32 %s244_s13, 3 }
  0x60   : > { %s1688_s19 = scalar_lea.hbm %s1889_s0, %s1039_s14  ;;  %s248_s20 = scalar_lea.vmem [#allocation2], %s1038_s15 }
  0x61   : > { %s255_s11 = sshll.u32 %s248_s20, 4  ;;  %p1690_p11 = pnand %p1211_p6, %p40_p10  ;;  %s1694_s11 = int_to_ptr.vmem [resolvable:$true] %s255_s11 }
  0x62   : > { %s245_s10 = scalar_lea.sflag [#allocation3], %s244_s13  ;;  %s1379_s26 = scalar_lea.hbm %s1688_s19, 128 }
  0x63   : > { %p1380_p7 = scmp.ne.s32.totalorder %s1688_s19, %s1379_s26  ;;  %p1381_p9 = pneg %p1690_p11 }
  0x64   : > { %s1384_s16 = scalar_lea.hbm %s1889_s0, 256  ;;  %p1385_p2 = scmp.lt.u32.totalorder %s1688_s19, %s1889_s0 }
  0x65   : > { %p1382_p12 = pnand %p1381_p9, %p1380_p7  ;;  %p1386_p1 = scmp.lt.u32.totalorder %s1384_s16, %s1379_s26 }
  0x66   : > { %p1388_p8 = scmp.lt.u32.totalorder %s1379_s26, %s1688_s19 }
  0x67   : > { %p1383_p0 = pneg %p1382_p12  ;;  %p1387_p4 = por %p1386_p1, %p1385_p2 }
  0x69   : > { %p1389_p13 = por %p1388_p8, %p1387_p4 }
  0x6b   : > { %p1390_p6 = pnand %p1389_p13, %p1383_p0 }
  0x6d   : > { %1393 = shalt.err (!%p1390_p6)
}
  0x6e   : > { %s1394_s13 = scalar_lea.vmem %s1694_s11, 128  ;;  %s1492_s17 = smov [#allocation2]  }
  0x6f   : > { %p1395_p10 = scmp.ne.s32.totalorder %s1694_s11, %s1394_s13  ;;  %s1399_s18 = sshll.u32 %s1492_s17, 4  ;;  %s1400_s18 = int_to_ptr.vmem [resolvable:$false] %s1399_s18 }
  0x70   : > { %s1401_s20 = scalar_lea.vmem %s1400_s18, 256  ;;  %p1402_p12 = scmp.lt.s32.totalorder %s1694_s11, %s1400_s18 }
  0x71   : > { %p1397_p3 = pnand %p1395_p10, %p1381_p9  ;;  %p1403_p2 = scmp.lt.s32.totalorder %s1401_s20, %s1394_s13 }
  0x73   : > { %p1398_p7 = pneg %p1397_p3  ;;  %p1404_p1 = por %p1403_p2, %p1402_p12 }
  0x75   : > { %p1405_p4 = pnand %p1404_p1, %p1398_p7 }
  0x77   : > { %1408 = shalt.err (!%p1405_p4)
}
  0x78   : > { %1203 = dma.hbm_to_vmem [thread:$0]  (!%p1690_p11), %s1688_s19, 128, %s1694_s11, %s245_s10  }
  0x79   : > { %p1909_p0 = scmp.ne.s32.totalorder %s1902_s29, 0 }
  0x7a   : > { %s1724_s26 = sand.u32 (!%p1909_p0), 1, %s1475_s22   ;;  %p1910_p9 = scmp.ne.s32.totalorder (!%p1909_p0), %s1900_s27, 0 }
  0x7b   : > { %264 = sbr.rel (%p1909_p0) target bundleno = 712 (0x2c8), region = 44  ;;  %s1041_s30 = sshll.u32 (!%p1909_p0), %s1724_s26, 3 }
  0x7c   : > { %s267_s1 = scalar_lea.sflag (!%p1909_p0), [#allocation3], %s1724_s26  ;;  %s1730_s16 = scalar_lea.vmem (!%p1909_p0), [#allocation2], %s1041_s30 }
  0x82   : > { %1454 = dma.done.wait (%p1910_p9), %s267_s1, 128  }
  0x83   : > { %1456 = vsyncadd (%p1910_p9), %s267_s1, 4294967168  ;;  %p1911_p11 = scmp.eq.s32.totalorder %s1558_s25, 0 }
  0x85   : > { %1458 = dma.done.wait (%p1911_p11), [#allocation6], 6144   ;;  %p1912_p8 = pmov %p1911_p11 }
  0x87   : > { %1460 = vsyncadd (%p1912_p8), [#allocation6], 4294961152  ;;  %p1913_p13 = pmov %p1912_p8 }
  0x88   : > { %p1914_p6 = pmov %p1912_p8 }
  0x89   : > { %1462 = dma.done.wait (%p1913_p13), [#allocation9], 1024  }
  0x8a   : > { %1464 = vsyncadd (%p1914_p6), [#allocation9], 4294966272  ;;  %v1493_v0 = vmov 0.0   ;;  %v314_v1 = vld [vmem:[#allocation5 + $0x8] sm:$0xff]  ;;  %v316_v2 = vld [vmem:[#allocation5 + $0x18] sm:$0xff]  ;;  %vm1494_vm0 = vmmov 0  }
  0x8b   : > { %421 = vmatprep.mubr.f32.mxu0 %v1493_v0  ;;  %1114 = vmatprep.subr.bf16.mxu1 %v1493_v0  ;;  %v313_v3 = vld [vmem:[#allocation5] sm:$0xff]  ;;  %v1134_v4 = vpack.c.bf16 %v316_v2, %v314_v1  ;;  %v315_v5 = vld [vmem:[#allocation5 + $0x10] sm:$0xff]  ;;  %v318_v6 = vld [vmem:[#allocation5 + $0x28] sm:$0xff]  ;;  %s1080_s7 = sshll.u32 %s1558_s25, 7  ;;  %s310_s10 = scalar_lea.vmem [#allocation10], %s1041_s30 }
  0x8c   : > { %v320_v7 = vld [vmem:[#allocation5 + $0x38] sm:$0xff]  ;;  %v1136_v8 = vpack.c.bf16 %v315_v5, %v313_v3  ;;  %v317_v10 = vld [vmem:[#allocation5 + $0x20] sm:$0xff]  ;;  %v319_v11 = vld [vmem:[#allocation5 + $0x30] sm:$0xff]  ;;  %1130 = vmatprep.mubr.msk.bf16.mxu1 %vm1494_vm0, %v1493_v0  ;;  %s933_s14 = sshll.u32 %s310_s10, 4  ;;  %s1845_s17 = scalar_lea.hbm %s1895_s6, %s1080_s7  ;;  %s1847_s14 = int_to_ptr.vmem [resolvable:$true] %s933_s14 }
  0x8d   : > { %v1138_v9 = vpack.c.bf16 %v320_v7, %v318_v6  ;;  %v322_v12 = vld [vmem:[#allocation5 + $0x48] sm:$0xff]  ;;  %1135 = vmatprep.subr.bf16.mxu0 %v1134_v4  ;;  %v324_v13 = vld [vmem:[#allocation5 + $0x58] sm:$0xff]  ;;  %v1140_v14 = vpack.c.bf16 %v319_v11, %v317_v10  ;;  %v321_v16 = vld [vmem:[#allocation5 + $0x40] sm:$0xff]  ;;  %s920_s18 = scalar_lea.sflag [#allocation4], %s1724_s26  ;;  %s1409_s20 = scalar_lea.vmem %s1847_s14, 128 }
  0x8e   : > { %1137 = vmatpush1.bf16.msra.mxu0 %v1136_v8  ;;  %v1142_v15 = vpack.c.bf16 %v324_v13, %v322_v12  ;;  %v323_v17 = vld [vmem:[#allocation5 + $0x50] sm:$0xff]  ;;  %v326_v18 = vld [vmem:[#allocation5 + $0x68] sm:$0xff]  ;;  %v328_v19 = vld [vmem:[#allocation5 + $0x78] sm:$0xff]  ;;  %v347_v13 = vlaneseq  ;;  %p1410_p10 = scmp.ne.s32.totalorder %s1847_s14, %s1409_s20  ;;  %s1501_s25 = smov [#allocation10]  }
  0x8f   : > { %1139 = vmatprep.subr.bf16.mxu0 %v1138_v9  ;;  %v1144_v20 = vpack.c.bf16 %v323_v17, %v321_v16  ;;  %v1146_v21 = vpack.c.bf16 %v328_v19, %v326_v18  ;;  %v325_v22 = vld [vmem:[#allocation5 + $0x60] sm:$0xff]  ;;  %v327_v23 = vld [vmem:[#allocation5 + $0x70] sm:$0xff]  ;;  %v330_v24 = vld [vmem:[#allocation5 + $0x88] sm:$0xff]  ;;  %s1413_s30 = sshll.u32 %s1501_s25, 4  ;;  %s1414_s30 = int_to_ptr.vmem [resolvable:$false] %s1413_s30 }
  0x90   : > { %v332_v25 = vld [vmem:[#allocation5 + $0x98] sm:$0xff]  ;;  %v329_v26 = vld [vmem:[#allocation5 + $0x80] sm:$0xff]  ;;  %v331_v27 = vld [vmem:[#allocation5 + $0x90] sm:$0xff]  ;;  %v1148_v28 = vpack.c.bf16 %v327_v23, %v325_v22  ;;  %p1411_p3 = pnand %p1410_p10, %p1679_p5  ;;  %s1415_s1 = scalar_lea.vmem %s1414_s30, 256 }
  0x91   : > { %v334_v29 = vld [vmem:[#allocation5 + $0xa8] sm:$0xff]  ;;  %v336_v30 = vld [vmem:[#allocation5 + $0xb8] sm:$0xff]  ;;  %v1150_v31 = vpack.c.bf16 %v332_v25, %v330_v24  ;;  %v333_v32 = vld [vmem:[#allocation5 + $0xa0] sm:$0xff]  ;;  %v1152_v34 = vpack.c.bf16 %v331_v27, %v329_v26  ;;  %p1416_p12 = scmp.lt.s32.totalorder %s1847_s14, %s1414_s30  ;;  %p1417_p2 = scmp.lt.s32.totalorder %s1415_s1, %s1409_s20 }
  0x92   : > { %1141 = vmatpush1.bf16.msra.mxu0 %v1140_v14  ;;  %v335_v33 = vld [vmem:[#allocation5 + $0xb0] sm:$0xff]  ;;  %v338_v35 = vld [vmem:[#allocation5 + $0xc8] sm:$0xff]  ;;  %v340_v36 = vld [vmem:[#allocation5 + $0xd8] sm:$0xff]  ;;  %v1154_v37 = vpack.c.bf16 %v336_v30, %v334_v29  ;;  %v348_v14 = vshrl.u32 %v347_v13, 7  ;;  %p1412_p7 = pneg %p1411_p3 }
  0x93   : > { %1143 = vmatprep.subr.bf16.mxu0 %v1142_v15  ;;  %v337_v38 = vld [vmem:[#allocation5 + $0xc0] sm:$0xff]  ;;  %v339_v39 = vld [vmem:[#allocation5 + $0xd0] sm:$0xff]  ;;  %v1156_v40 = vpack.c.bf16 %v335_v33, %v333_v32  ;;  %v342_v41 = vld [vmem:[#allocation5 + $0xe8] sm:$0xff]  ;;  %v1158_v43 = vpack.c.bf16 %v340_v36, %v338_v35  ;;  %p1418_p1 = por %p1417_p2, %p1416_p12 }
  0x94   : > { %v344_v42 = vld [vmem:[#allocation5 + $0xf8] sm:$0xff]  ;;  %v341_v44 = vld [vmem:[#allocation5 + $0xe0] sm:$0xff]  ;;  %v343_v45 = vld [vmem:[#allocation5 + $0xf0] sm:$0xff]  ;;  %v1160_v46 = vpack.c.bf16 %v339_v39, %v337_v38  ;;  %v349_v15 = vsub.s32 0, %v348_v14  ;;  %v353_v17 = vsub.s32 1, %v348_v14 }
  0x95   : > { %v1162_v47 = vpack.c.bf16 %v344_v42, %v342_v41  ;;  %v1164_v48 = vpack.c.bf16 %v343_v45, %v341_v44  ;;  %v312_v49 = vld [vmem:[%s1730_s16] sm:$0xff]  ;;  %v1263_v50 = vld [vmem:[#allocation7 + $0x40] sm:$0xff]   ;;  %v1266_v53 = vld [vmem:[#allocation7 + $0x48] sm:$0xff]   ;;  %p1419_p4 = pnand %p1418_p1, %p1412_p7 }
  0x96   : > { %1145 = vmatpush1.bf16.msra.mxu0 %v1144_v20  ;;  %v1264_v51 = vld [vmem:[#allocation8] sm:$0xff]   ;;  %v1267_v54 = vld [vmem:[#allocation8 + $0x8] sm:$0xff]   ;;  %v1269_v56 = vld [vmem:[#allocation7 + $0x50] sm:$0xff]   ;;  %v634_v9 = vmax.f32 %v312_v49, 0.0 }
  0x97   : > { %1147 = vmatprep.subr.bf16.mxu0 %v1146_v21  ;;  %v1265_v52 = vld [vmem:[#allocation7] sm:$0xff]   ;;  %1115 = vmatpush3.bf16.msra.mxu1 %v1264_v51  ;;  %v1268_v55 = vld [vmem:[#allocation7 + $0x8] sm:$0xff]   ;;  %v1270_v57 = vld [vmem:[#allocation8 + $0x10] sm:$0xff]   ;;  %v1498_v51 = vmov 2102212464  }
  0x98   : > { %1116 = vmatprep.subr.bf16.mxu1 %v1493_v0  ;;  %v1271_v58 = vld [vmem:[#allocation7 + $0x10] sm:$0xff]   ;;  %v1272_v59 = vld [vmem:[#allocation7 + $0x58] sm:$0xff]   ;;  %v1275_v62 = vld [vmem:[#allocation7 + $0x60] sm:$0xff]   ;;  %v669_v12 = vpack.c.bf16 %v634_v9, %v634_v9 }
  0x99   : > { %v1273_v60 = vld [vmem:[#allocation8 + $0x18] sm:$0xff]   ;;  %v1276_v63 = vld [vmem:[#allocation8 + $0x20] sm:$0xff]   ;;  %v1278_v2 = vld [vmem:[#allocation7 + $0x68] sm:$0xff]  }
  0x9a   : > { %1149 = vmatpush1.bf16.msra.mxu0 %v1148_v28  ;;  %v1274_v61 = vld [vmem:[#allocation7 + $0x18] sm:$0xff]   ;;  %v1277_v1 = vld [vmem:[#allocation7 + $0x20] sm:$0xff]   ;;  %v1279_v3 = vld [vmem:[#allocation8 + $0x28] sm:$0xff]  }
  0x9b   : > { %1151 = vmatprep.subr.bf16.mxu0 %v1150_v31  ;;  %1117 = vmatpush3.bf16.msra.mxu1 %v1267_v54  ;;  %v1280_v4 = vld [vmem:[#allocation7 + $0x28] sm:$0xff]   ;;  %v1281_v5 = vld [vmem:[#allocation7 + $0x70] sm:$0xff]   ;;  %v1284_v8 = vld [vmem:[#allocation7 + $0x78] sm:$0xff]  }
  0x9c   : > { %1118 = vmatprep.subr.bf16.mxu1 %v1493_v0  ;;  %v1282_v6 = vld [vmem:[#allocation8 + $0x30] sm:$0xff]   ;;  %v1285_v10 = vld [vmem:[#allocation8 + $0x38] sm:$0xff]  }
  0x9d   : > { %v1283_v7 = vld [vmem:[#allocation7 + $0x30] sm:$0xff]   ;;  %v1286_v11 = vld [vmem:[#allocation7 + $0x38] sm:$0xff]  }
  0x9e   : > { %1153 = vmatpush1.bf16.msra.mxu0 %v1152_v34  ;;  %v345_v16 = vld [vmem:[%s1891_s2] sm:$0x3] }
  0x9f   : > { %1155 = vmatprep.subr.bf16.mxu0 %v1154_v37  ;;  %1119 = vmatpush3.bf16.msra.mxu1 %v1270_v57  ;;  %v350_v18 = vrot.slane %v345_v16, %v349_v15  ;;  %v354_v19 = vrot.slane %v345_v16, %v353_v17 }
  0xa0   : > { %1120 = vmatprep.subr.bf16.mxu1 %v1493_v0 }
  0xa2   : > { %1157 = vmatpush1.bf16.msra.mxu0 %v1156_v40 }
  0xa3   : > { %1159 = vmatprep.subr.bf16.mxu0 %v1158_v43  ;;  %1121 = vmatpush3.bf16.msra.mxu1 %v1273_v60  ;;  %v1495_v43 = vmov 683565275   ;;  %v1500_v60 = vmov 1326507024  }
  0xa4   : > { %1122 = vmatprep.subr.bf16.mxu1 %v1493_v0 }
  0xa6   : > { %1161 = vmatpush1.bf16.msra.mxu0 %v1160_v46 }
  0xa7   : > { %1163 = vmatprep.subr.bf16.mxu0 %v1162_v47  ;;  %1123 = vmatpush3.bf16.msra.mxu1 %v1276_v63  ;;  %v1496_v47 = vmov 2475754826  }
  0xa8   : > { %1124 = vmatprep.subr.bf16.mxu1 %v1493_v0 }
  0xaa   : > { %1165 = vmatpush1.bf16.msra.mxu0 %v1164_v48 }
  0xab   : > { %1092 = vmatprep.subr.bf16.mxu0 %v1263_v50  ;;  %1125 = vmatpush3.bf16.msra.mxu1 %v1279_v3 }
  0xac   : > { %1126 = vmatprep.subr.bf16.mxu1 %v1493_v0 }
  0xad   : > { %422 = vmatmul.mubr.f32.vlgmr.msra.gmra.mrb[0].mxu0 %v312_v49  ;;  %v1497_v49 = vmov 2131351028  }
  0xae   : > { %1093 = vmatpush3.bf16.msra.mxu0 %v1265_v52 }
  0xaf   : > { %1094 = vmatprep.subr.bf16.mxu0 %v1266_v53  ;;  %1127 = vmatpush3.bf16.msra.mxu1 %v1282_v6  ;;  %v1499_v53 = vmov 920167782  }
  0xb0   : > { %1128 = vmatprep.subr.bf16.mxu1 %v1493_v0 }
  0xb2   : > { %1095 = vmatpush3.bf16.msra.mxu0 %v1268_v55 }
  0xb3   : > { %1096 = vmatprep.subr.bf16.mxu0 %v1269_v56  ;;  %1129 = vmatpush3.bf16.msra.mxu1 %v1285_v10 }
  0xb6   : > { %1097 = vmatpush3.bf16.msra.mxu0 %v1271_v58  ;;  %1131 = vmatmul.mubr.bf16.vlgmr.msra.gmra.mrb[0].mxu1 %v669_v12 }
  0xb7   : > { %1098 = vmatprep.subr.bf16.mxu0 %v1272_v59 }
  0xba   : > { %1099 = vmatpush3.bf16.msra.mxu0 %v1274_v61 }
  0xbb   : > { %1100 = vmatprep.subr.bf16.mxu0 %v1275_v62 }
  0xbe   : > { %1101 = vmatpush3.bf16.msra.mxu0 %v1277_v1 }
  0xbf   : > { %1102 = vmatprep.subr.bf16.mxu0 %v1278_v2 }
  0xc2   : > { %1103 = vmatpush3.bf16.msra.mxu0 %v1280_v4 }
  0xc3   : > { %1104 = vmatprep.subr.bf16.mxu0 %v1281_v5 }
  0xc6   : > { %1105 = vmatpush3.bf16.msra.mxu0 %v1283_v7 }
  0xc7   : > { %1106 = vmatprep.subr.bf16.mxu0 %v1284_v8 }
  0xca   : > { %1107 = vmatpush3.bf16.msra.mxu0 %v1286_v11 }
 0x180   : > { %v423_v20 = vpop.f32.mrb[0].mxu0 }
 0x181   : > { %v1758_v21 = vadd.f32 %v423_v20, %v350_v18  ;;  %v425_v22 = vpop.f32.mrb[1].mxu0 }
 0x182   : > { %v1760_v0 = vadd.f32 %v425_v22, %v354_v19 }
 0x183   : > { %v428_v23 = vand.u32 2147483647, %v1758_v21  ;;  %v431_v24 = vand.u32 2139095040, %v1758_v21  ;;  %vm430_vm15 = vcmp.lt.s32.totalorder %v1758_v21, 0 }
 0x184   : > { %v534_v25 = vand.u32 2139095040, %v1760_v0  ;;  %v531_v28 = vand.u32 2147483647, %v1760_v0 }
 0x185   : > { %v432_v26 = vshrl.u32 %v431_v24, 23  ;;  %v435_v27 = vand.u32 8388607, %v428_v23  ;;  %vm1813_vm0 = vcmp.le.f32.partialorder %v428_v23, 0.7853982 }
 0x186   : > { %v535_v29 = vshrl.u32 %v534_v25, 23  ;;  %v1770_v34 = vand.u32 8388607, %v531_v28 }
 0x187   : > { %v1046_v30 = vadd.s32 4294967169, %v432_v26  ;;  %v436_v33 = vor.u32 8388608, %v435_v27 }
 0x188   : > { %v1050_v31 = vadd.s32 4294967169, %v535_v29  ;;  %v539_v41 = vor.u32 8388608, %v1770_v34 }
 0x189   : > { %v438_v32 = vadd.s32 1, %v1046_v30  ;;  %v1772_v40 = vshll.u32 %v436_v33, 8 }
 0x18a   : > { %v541_v35 = vadd.s32 1, %v1050_v31 }
 0x18b   : > { %vm439_vm1 = vcmp.gt.s32.totalorder %v438_v32, 0 }
 0x18c   : > { %v440_v36 = vsel %vm439_vm1, %v438_v32, 0  ;;  %vm542_vm2 = vcmp.gt.s32.totalorder %v541_v35, 0  ;;  %vm533_vm1 = vcmp.lt.s32.totalorder %v1760_v0, 0 }
 0x18d   : > { %v441_v37 = vshrl.u32 %v440_v36, 5  ;;  %v442_v38 = vand.u32 31, %v440_v36  ;;  %v543_v39 = vsel %vm542_vm2, %v541_v35, 0  ;;  %v579_v35 = vshll.u32 %v539_v41, 8 }
 0x18e   : > { %v1775_v45 = vshrl.u32 %v543_v39, 5  ;;  %v545_v46 = vand.u32 31, %v543_v39  ;;  %vm1825_vm2 = vcmp.le.f32.partialorder %v531_v28, 0.7853982 }
 0x18f   : > { %v443_v42 = vsub.s32 32, %v442_v38  ;;  %v445_v44 = vshll.u32 %v1495_v43, %v442_v38  ;;  %v448_v48 = vshll.u32 %v1496_v47, %v442_v38  ;;  %v451_v50 = vshll.u32 %v1497_v49, %v442_v38 }
 0x190   : > { %v454_v52 = vshll.u32 %v1498_v51, %v442_v38  ;;  %v457_v54 = vshll.u32 %v1499_v53, %v442_v38  ;;  %vm460_vm3 = vcmp.lt.s32.totalorder %v441_v37, 1  ;;  %vm461_vm4 = vcmp.lt.s32.totalorder %v441_v37, 2 }
 0x191   : > { %v446_v55 = vshrl.u32 %v1496_v47, %v443_v42  ;;  %v449_v56 = vshrl.u32 %v1497_v49, %v443_v42  ;;  %v452_v57 = vshrl.u32 %v1498_v51, %v443_v42  ;;  %v444_v58 = vshrl.u32 %v1495_v43, %v443_v42 }
 0x192   : > { %v455_v59 = vshrl.u32 %v1499_v53, %v443_v42  ;;  %v458_v61 = vshrl.u32 %v1500_v60, %v443_v42  ;;  %v546_v2 = vsub.s32 32, %v545_v46  ;;  %vm462_vm5 = vcmp.lt.s32.totalorder %v441_v37, 3 }
 0x193   : > { %v447_v62 = vor.u32 %v446_v55, %v445_v44  ;;  %v450_v63 = vor.u32 %v449_v56, %v448_v48  ;;  %v453_v1 = vor.u32 %v452_v57, %v451_v50  ;;  %vm463_vm6 = vcmp.lt.s32.totalorder %v441_v37, 4 }
 0x194   : > { %v456_v3 = vor.u32 %v455_v59, %v454_v52  ;;  %v459_v4 = vor.u32 %v458_v61, %v457_v54  ;;  %v548_v12 = vshll.u32 %v1495_v43, %v545_v46  ;;  %v549_v15 = vshrl.u32 %v1496_v47, %v546_v2 }
 0x195   : > { %v464_v5 = vsel %vm460_vm3, %v444_v58, %v447_v62  ;;  %v465_v6 = vsel %vm463_vm6, %v453_v1, 2102212464  ;;  %v468_v7 = vsel %vm460_vm3, %v447_v62, %v450_v63  ;;  %v472_v8 = vsel %vm460_vm3, %v450_v63, %v453_v1 }
 0x196   : > { %v466_v9 = vsel %vm462_vm5, %v450_v63, %v465_v6  ;;  %v469_v10 = vsel %vm463_vm6, %v456_v3, 920167782  ;;  %v473_v11 = vsel %vm463_vm6, %v459_v4, 1326507024  ;;  %v551_v16 = vshll.u32 %v1496_v47, %v545_v46 }
 0x197   : > { %v470_v13 = vsel %vm462_vm5, %v453_v1, %v469_v10  ;;  %v474_v14 = vsel %vm462_vm5, %v456_v3, %v473_v11  ;;  %v467_v17 = vsel %vm461_vm4, %v464_v5, %v466_v9  ;;  %v552_v20 = vshrl.u32 %v1497_v49, %v546_v2 }
 0x198   : > { %v471_v18 = vsel %vm461_vm4, %v468_v7, %v470_v13  ;;  %v475_v19 = vsel %vm461_vm4, %v472_v8, %v474_v14  ;;  %v550_v27 = vor.u32 %v549_v15, %v548_v12  ;;  %v554_v30 = vshll.u32 %v1497_v49, %v545_v46 }
 0x199   : > { %v1784_v22 = vmul.u32.u64.low %v1772_v40, %v475_v19  ;;  %v1785_v24 = vmul.u32.u64.high %v1772_v40, %v475_v19, %v1784_v22  ;;  %v1788_v25 = vmul.u32.u64.low %v1772_v40, %v471_v18  ;;  %v1789_v26 = vmul.u32.u64.high %v1772_v40, %v471_v18, %v1788_v25 }
 0x19a   : > { %v553_v29 = vor.u32 %v552_v20, %v551_v16  ;;  %v555_v31 = vshrl.u32 %v1498_v51, %v546_v2  ;;  %v557_v32 = vshll.u32 %v1498_v51, %v545_v46  ;;  %v558_v33 = vshrl.u32 %v1499_v53, %v546_v2 }
 0x19b   : > { %v561_v34 = vshrl.u32 %v1500_v60, %v546_v2  ;;  %v483_v36 = vmul.u32 %v1772_v40, %v467_v17  ;;  %v547_v37 = vshrl.u32 %v1495_v43, %v546_v2  ;;  %v560_v39 = vshll.u32 %v1499_v53, %v545_v46 }
 0x19c   : > { %v556_v38 = vor.u32 %v555_v31, %v554_v30  ;;  %vm485_vm7 = vc.u32 %v1785_v24, %v1788_v25  ;;  %v486_v42 = vadd.s32 1, %v1789_v26  ;;  %v559_v44 = vor.u32 %v558_v33, %v557_v32 }
 0x19d   : > { %vm563_vm8 = vcmp.lt.s32.totalorder %v1775_v45, 1  ;;  %v562_v47 = vor.u32 %v561_v34, %v560_v39  ;;  %vm565_vm9 = vcmp.lt.s32.totalorder %v1775_v45, 3  ;;  %vm566_vm10 = vcmp.lt.s32.totalorder %v1775_v45, 4 }
 0x19e   : > { %v571_v48 = vsel %vm563_vm8, %v550_v27, %v553_v29  ;;  %v487_v41 = vsel %vm485_vm7, %v486_v42, %v1789_v26  ;;  %v568_v49 = vsel %vm566_vm10, %v556_v38, 2102212464  ;;  %v572_v40 = vsel %vm566_vm10, %v559_v44, 920167782 }
 0x19f   : > { %v575_v43 = vsel %vm563_vm8, %v553_v29, %v556_v38  ;;  %v488_v50 = vadd.s32 %v487_v41, %v483_v36  ;;  %vm564_vm11 = vcmp.lt.s32.totalorder %v1775_v45, 2  ;;  %v573_v46 = vsel %vm565_vm9, %v556_v38, %v572_v40 }
 0x1a0   : > { %v576_v51 = vsel %vm566_vm10, %v562_v47, 1326507024  ;;  %v567_v52 = vsel %vm563_vm8, %v547_v37, %v550_v27  ;;  %v569_v53 = vsel %vm565_vm9, %v553_v29, %v568_v49  ;;  %v574_v54 = vsel %vm564_vm11, %v571_v48, %v573_v46 }
 0x1a1   : > { %v577_v55 = vsel %vm565_vm9, %v559_v44, %v576_v51  ;;  %v489_v56 = vadd.s32 536870912, %v488_v50  ;;  %v1799_v58 = vmul.u32.u64.low %v579_v35, %v574_v54  ;;  %v1800_v59 = vmul.u32.u64.high %v579_v35, %v574_v54, %v1799_v58 }
 0x1a2   : > { %v578_v57 = vsel %vm564_vm11, %v575_v43, %v577_v55  ;;  %v570_v63 = vsel %vm564_vm11, %v567_v52, %v569_v53  ;;  %v484_v16 = vadd.s32 %v1788_v25, %v1785_v24  ;;  %vm520_vm6 = vweird.f32 %v1758_v21 }
 0x1a3   : > { %v1802_v60 = vmul.u32.u64.low %v579_v35, %v578_v57  ;;  %v1803_v61 = vmul.u32.u64.high %v579_v35, %v578_v57, %v1802_v60  ;;  %v490_v62 = vshrl.u32 %v489_v56, 30  ;;  %v589_v2 = vadd.s32 1, %v1800_v59 }
 0x1a4   : > { %v586_v45 = vmul.u32 %v579_v35, %v570_v63  ;;  %vm623_vm10 = vweird.f32 %v1760_v0 }
 0x1a5   : > { %v491_v1 = vshll.u32 %v490_v62, 30  ;;  %vm588_vm12 = vc.u32 %v1803_v61, %v1799_v58  ;;  %v587_v36 = vadd.s32 %v1799_v58, %v1803_v61  ;;  %v514_v40 = vsub.s32 4, %v490_v62 }
 0x1a6   : > { %v590_v4 = vsel %vm588_vm12, %v589_v2, %v1800_v59 }
 0x1a7   : > { %v492_v3 = vsub.s32 %v488_v50, %v491_v1  ;;  %v591_v5 = vadd.s32 %v590_v4, %v586_v45  ;;  %v515_v52 = vsel %vm430_vm15, %v514_v40, %v490_v62 }
 0x1a8   : > { %v517_v23 = vsel %vm1813_vm0, 0, %v515_v52 }
 0x1a9   : > { %v494_v6 = vsub.s32 0, %v492_v3  ;;  %v592_v7 = vadd.s32 536870912, %v591_v5  ;;  %v521_v59 = vand.u32 3, %v517_v23 }
 0x1ab   : > { %v1047_v8 = vmin.u32 %v494_v6, %v492_v3  ;;  %v593_v9 = vshrl.u32 %v592_v7, 30  ;;  %vm526_vm3 = vcmp.eq.s32.totalorder %v521_v59, 2  ;;  %vm523_vm4 = vcmp.eq.s32.totalorder %v521_v59, 0 }
 0x1ac   : > { %vm522_vm5 = vcmp.lt.s32.totalorder %v521_v59, 2 }
 0x1ad   : > { %v496_v10 = vclz %v1047_v8  ;;  %v594_v11 = vshll.u32 %v593_v9, 30  ;;  %v617_v57 = vsub.s32 4, %v593_v9 }
 0x1af   : > { %v1048_v12 = vadd.s32 4294967294, %v496_v10  ;;  %v595_v13 = vsub.s32 %v591_v5, %v594_v11  ;;  %v618_v62 = vsel %vm533_vm1, %v617_v57, %v593_v9 }
 0x1b0   : > { %v620_v2 = vsel %vm1825_vm2, 0, %v618_v62 }
 0x1b1   : > { %vm1049_vm13 = vcmp.lt.s32.totalorder %v1048_v12, 0  ;;  %v597_v15 = vsub.s32 0, %v595_v13  ;;  %v624_v5 = vand.u32 3, %v620_v2 }
 0x1b2   : > { %v499_v14 = vsel %vm1049_vm13, 0, %v1048_v12 }
 0x1b3   : > { %v500_v17 = vsub.s32 32, %v499_v14  ;;  %v504_v18 = vsub.s32 4294967266, %v499_v14  ;;  %v1051_v19 = vmin.u32 %v597_v15, %v595_v13  ;;  %v501_v20 = vshll.u32 %v492_v3, %v499_v14  ;;  %v768_v15 = vpop.f32.mrb[0].mxu1 }
 0x1b4   : > { %vm629_vm7 = vcmp.eq.s32.totalorder %v624_v5, 2  ;;  %vm626_vm8 = vcmp.eq.s32.totalorder %v624_v5, 0  ;;  %vm625_vm9 = vcmp.lt.s32.totalorder %v624_v5, 2 }
 0x1b5   : > { %v502_v22 = vshrl.u32 %v484_v16, %v500_v17  ;;  %v505_v26 = vadd.s32 127, %v504_v18  ;;  %v599_v27 = vclz %v1051_v19  ;;  %v1132_v16 = vpop.f32.mrb[1].mxu1 }
 0x1b6   : > { %v771_v17 = vpop.f32.mrb[2].mxu1 }
 0x1b7   : > { %v503_v29 = vor.u32 %v502_v22, %v501_v20  ;;  %v506_v30 = vshll.u32 %v505_v26, 23  ;;  %v1052_v31 = vadd.s32 4294967294, %v599_v27  ;;  %v1133_v18 = vpop.f32.mrb[3].mxu1 }
 0x1b9   : > { %v507_v32 = vor.u32 4788187, %v506_v30  ;;  %vm1053_vm14 = vcmp.lt.s32.totalorder %v1052_v31, 0  ;;  %v510_v34 = vcvt.s32.f32 %v503_v29 }
 0x1ba   : > { %v602_v35 = vsel %vm1053_vm14, 0, %v1052_v31 }
 0x1bb   : > { %v508_v33 = vand.u32 2147483647, %v507_v32  ;;  %v603_v37 = vsub.s32 32, %v602_v35  ;;  %v607_v38 = vsub.s32 4294967266, %v602_v35  ;;  %v604_v25 = vshll.u32 %v595_v13, %v602_v35 }
 0x1bd   : > { %v511_v24 = vmul.f32 %v510_v34, %v508_v33  ;;  %v605_v39 = vshrl.u32 %v587_v36, %v603_v37  ;;  %v608_v42 = vadd.s32 127, %v607_v38 }
 0x1bf   : > { %v512_v44 = vxor.u32 2147483648, %v511_v24  ;;  %v606_v47 = vor.u32 %v605_v39, %v604_v25  ;;  %v609_v48 = vshll.u32 %v608_v42, 23 }
 0x1c1   : > { %v513_v49 = vsel %vm430_vm15, %v512_v44, %v511_v24  ;;  %v610_v50 = vor.u32 4788187, %v609_v48  ;;  %v613_v51 = vcvt.s32.f32 %v606_v47 }
 0x1c2   : > { %v516_v43 = vsel %vm1813_vm0, %v1758_v21, %v513_v49 }
 0x1c3   : > { %1287 = vcosq.f32 %v516_v43  ;;  %v611_v46 = vand.u32 2147483647, %v610_v50 }
 0x1c4   : > { %1289 = vsinq.f32 %v516_v43 }
 0x1c5   : > { %v614_v53 = vmul.f32 %v613_v51, %v611_v46 }
 0x1c7   : > { %v615_v54 = vxor.u32 2147483648, %v614_v53 }
 0x1c9   : > { %v616_v56 = vsel %vm533_vm1, %v615_v54, %v614_v53 }
 0x1ca   : > { %v619_v58 = vsel %vm1825_vm2, %v1760_v0, %v616_v56  ;;  %v1078_v0 = vld [vmem:[%s1894_s5] ss:$0 sm:$0xff] }
 0x1cb   : > { %1291 = vcosq.f32 %v619_v58 }
 0x1cc   : > { %1293 = vsinq.f32 %v619_v58 }
 0x1cd   : > { %v1288_v60 = vpop.eup %1287 }
 0x1ce   : > { %v1290_v61 = vpop.eup %1289  ;;  %v527_v63 = vxor.u32 2147483648, %v1288_v60 }
 0x1cf   : > { %v524_v1 = vxor.u32 2147483648, %v1290_v61 }
 0x1d0   : > { %v528_v28 = vsel %vm526_vm3, %v527_v63, %v1290_v61 }
 0x1d1   : > { %v525_v45 = vsel %vm523_vm4, %v1288_v60, %v524_v1 }
 0x1d2   : > { %v529_v3 = vsel %vm522_vm5, %v525_v45, %v528_v28 }
 0x1d3   : > { %v530_v4 = vsel %vm520_vm6, nan, %v529_v3 }
 0x1d4   : > { %v635_v21 = vpack.c.bf16 %v530_v4, %v530_v4 }
 0x1d5   : > { %v1292_v6 = vpop.eup %1291 }
 0x1d6   : > { %v1294_v7 = vpop.eup %1293  ;;  %v630_v8 = vxor.u32 2147483648, %v1292_v6 }
 0x1d7   : > { %v627_v10 = vxor.u32 2147483648, %v1294_v7 }
 0x1d8   : > { %v631_v9 = vsel %vm629_vm7, %v630_v8, %v1294_v7 }
 0x1d9   : > { %v628_v11 = vsel %vm626_vm8, %v1292_v6, %v627_v10 }
 0x1da   : > { %v632_v12 = vsel %vm625_vm9, %v628_v11, %v631_v9 }
 0x1db   : > { %v633_v13 = vsel %vm623_vm10, nan, %v632_v12 }
 0x1dc   : > { %v636_v14 = vpack.c.bf16 %v633_v13, %v633_v13 }
 0x1de   : > { %902 = vmatprep.mubr.bf16.mxu0 %v636_v14 }
 0x1df   : > { %903 = vmatmul.mubr.bf16.vlgmr.msra.gmra.mrb[4].mxu0 %v635_v21 }
 0x2b2   : > { %v1108_v19 = vpop.f32.mrb[4].mxu0 }
 0x2b3   : > { %v1109_v20 = vpop.f32.mrb[5].mxu0 }
 0x2b4   : > { %v1110_v22 = vadd.f32 %v1109_v20, %v1108_v19  ;;  %v1111_v26 = vpop.f32.mrb[6].mxu0 }
 0x2b5   : > { %v1112_v27 = vpop.f32.mrb[7].mxu0 }
 0x2b6   : > { %v905_v29 = vadd.f32 %v1110_v22, %v768_v15 }
 0x2b8   : > { %v917_v30 = vadd.f32 %v1078_v0, %v905_v29 }
 0x2ba   : > { %918 = vst [vmem:[%s310_s10] sm:$0xff] %v917_v30 }
 0x2bb   : > { %1422 = shalt.err (!%p1419_p4)
}
 0x2bc   : > { %s1423_s26 = scalar_lea.hbm %s1845_s17, 128  ;;  %s1427_s29 = scalar_lea.hbm %s1895_s6, 256 }
 0x2bd   : > { %p1424_p0 = scmp.ne.s32.totalorder %s1845_s17, %s1423_s26  ;;  %p1428_p8 = scmp.lt.u32.totalorder %s1845_s17, %s1895_s6 }
 0x2be   : > { %p1429_p13 = scmp.lt.u32.totalorder %s1427_s29, %s1423_s26  ;;  %p1431_p10 = scmp.lt.u32.totalorder %s1423_s26, %s1845_s17 }
 0x2bf   : > { %p1425_p9 = pnand %p1424_p0, %p1679_p5 }
 0x2c0   : > { %p1430_p6 = por %p1429_p13, %p1428_p8 }
 0x2c1   : > { %p1426_p11 = pneg %p1425_p9 }
 0x2c2   : > { %p1432_p3 = por %p1431_p10, %p1430_p6 }
 0x2c4   : > { %p1433_p7 = pnand %p1432_p3, %p1426_p11 }
 0x2c6   : > { %1436 = shalt.err (!%p1433_p7)
}
 0x2c7   : > { %1188 = dma.vmem_to_hbm [thread:$0]  (%p1679_p5), %s1847_s14, 128, %s1845_s17, %s920_s18  }
 0x2c8 PF: > { %s945_s7 = sand.u32 1, %s1471_s21   ;;  %p1919_p12 = scmp.ne.s32.totalorder %s1901_s28, 0 }
 0x2c9   : > { %p1920_p2 = scmp.ge.s32.totalorder %s1483_s24, 2  ;;  %s946_s10 = scalar_lea.sflag [#allocation4], %s945_s7 }
 0x2cb   : > { %p1205_p1 = pnand %p1920_p2, %p1919_p12 }
 0x2cd   : > { %1466 = dma.done.wait (!%p1205_p1), %s946_s10, 128  }
 0x2ce   : > { %1468 = vsyncadd (!%p1205_p1), %s946_s10, 4294967168  ;;  %p21_p4 = scmp.ge.s32.totalorder %s1647_s12, 4   ;;  %s1921_s21 = smov %s1475_s22 }
 0x2cf   : > { %s1922_s22 = smov %s1479_s23  ;;  %s1923_s23 = smov %s1675_s8 }
 0x2d0   : > { %s1924_s24 = smov %s1647_s12  ;;  %23 = sbr.rel (!%p21_p4) target bundleno = 9 (0x9), region = 101 }
 0x2d7   :  { %951 = vsyncpa [#allocation3], 1 }
 0x2d8   :  { %953 = vsyncpa [#allocation3 + $0x1], 1 }
 0x2d9   :  { %954 = vsyncpa [#allocation6], 1 }
 0x2da   :  { %955 = vsyncpa [#allocation9], 1 }
 0x2db   :  { %956 = vsyncpa [#allocation4], 1 }
 0x2dc   :  { %958 = vsyncpa [#allocation4 + $0x1], 1 }

</bundles_post_ra>
